<compile_context>
chip_gen: v5e
topology: v5e:2x2
jax: 0.10.0
libtpu: 0.0.40
codegen_flags: <defaults>
</compile_context>

<pallas_src>
import jax
import jax.numpy as jnp
from jax.experimental import pallas as pl
from jax.experimental.pallas import tpu as pltpu

_LANE = 128  # vreg lane width


def _round_up(x: int, m: int) -> int:
    return ((x + m - 1) // m) * m


def _cdiv(a: int, b: int) -> int:
    return -(-a // b)


def _reshape_channels_kernel(x_ref, o_ref):
    # x_ref: (b_tile, wh, C)  ->  o_ref: (b_tile, C, wh)
    # Batched transpose of the last two dims (XLU work); hides under the DMA
    # in this purely memory-bound kernel.
    o_ref[...] = jnp.swapaxes(x_ref[...], 1, 2)


def _padded_tile_bytes(wh: int, n_channels: int, itemsize: int) -> int:
    """Padded VMEM bytes per batch element for the in (wh, C) + out (C, wh) tiles."""
    sub = 8 * max(1, 4 // itemsize)  # sublanes per tile: 8 f32 / 16 bf16 / 32 i8
    in_bytes = _round_up(wh, sub) * _round_up(n_channels, _LANE) * itemsize
    out_bytes = _round_up(n_channels, sub) * _round_up(wh, _LANE) * itemsize
    return in_bytes + out_bytes


def _pick_b_tile(batch: int, wh: int, n_channels: int, itemsize: int):
    """Largest batch tile fitting a ~12 MiB double-buffered budget, preferring
    >= 2 and an even number of grid steps (v7x megacore balance)."""
    per_elem = _padded_tile_bytes(wh, n_channels, itemsize)
    budget = 12 << 20  # double-buffered (in + out) target, safe on all gens
    max_b = max(1, budget // (2 * per_elem))
    max_b = min(max_b, batch)

    b_tile = max_b
    if batch > 1:
        floor = max(1, max_b // 4)  # don't shrink tiles >4x just for evenness
        chosen = None
        for bt in range(max_b, 0, -1):
            steps = _cdiv(batch, bt)
            if steps >= 2 and steps % 2 == 0:
                chosen = bt
                break
            if bt <= floor:
                break
        if chosen is not None:
            b_tile = chosen
        else:
            b_tile = min(max_b, max(1, _cdiv(batch, 2)))
    return b_tile, per_elem


def reshape_channels(x: jax.Array, width: int, height: int) -> jax.Array:
    """(B*W*H, C) -> (B, C, W, H); same semantics as the PyTorch module."""
    n_samples, n_channels = x.shape
    wh = width * height
    assert n_samples % wh == 0, "n_samples must be divisible by width*height"
    batch = n_samples // wh

    # Free view: row-major (b, w, h, c) -> (batch, wh, C).
    x3 = x.reshape(batch, wh, n_channels)

    itemsize = jnp.dtype(x.dtype).itemsize
    b_tile, per_elem = _pick_b_tile(batch, wh, n_channels, itemsize)
    grid = (pl.cdiv(batch, b_tile),)

    # Explicit scoped-VMEM limit from the padded tile math: in+out tiles,
    # double-buffered, plus headroom for Mosaic internal scratch.  Clamped to
    # [16 MiB, 32 MiB] so it is valid on every generation (v7x: 64 MiB phys).
    need = 2 * per_elem * b_tile
    vmem_limit = int(min(max(2 * need + (2 << 20), 16 << 20), 32 << 20))

    out = pl.pallas_call(
        _reshape_channels_kernel,
        out_shape=jax.ShapeDtypeStruct((batch, n_channels, wh), x.dtype),
        grid=grid,
        # Last two block dims equal the full array dims, so the (8,128)
        # divisibility constraint is satisfied for any wh / C; the leading
        # batch-tile dim may be partial on the last grid step (pl.cdiv grid).
        in_specs=[pl.BlockSpec((b_tile, wh, n_channels), lambda b: (b, 0, 0))],
        out_specs=pl.BlockSpec((b_tile, n_channels, wh), lambda b: (b, 0, 0)),
        compiler_params=pltpu.CompilerParams(
            dimension_semantics=("parallel",),
            vmem_limit_bytes=vmem_limit,
        ),
    )(x3)

    # Trailing view: (B, C, W*H) -> (B, C, W, H) — no data permutation.
    return out.reshape(batch, n_channels, width, height)


if __name__ == "__main__":
    # Small shapes consistent with the module: batch=2, channels=4, spatial=16x16.
    B, C, W, H = 2, 4, 16, 16
    key = jax.random.PRNGKey(0)
    x = jax.random.normal(key, (B * W * H, C), dtype=jnp.float32)

    y = reshape_channels(x, W, H)
    y = jax.block_until_ready(y)

    # Pure-JAX reference for correctness.
    ref = jnp.transpose(x.reshape(B, W, H, C), (0, 3, 1, 2))
    assert y.shape == (B, C, W, H), y.shape
    assert jnp.allclose(y, ref), "mismatch vs reference permute"

    print("KERNEL_OK")
</pallas_src>

<mosaic_0001>
module attributes {stable_mosaic.version = 11 : i64} {
  func.func @_reshape_channels_kernel(%arg0: i32, %arg1: memref<1x256x4xf32, #tpu.memory_space<vmem>>, %arg2: memref<1x4x256xf32, #tpu.memory_space<vmem>>) attributes {dimension_semantics = [#tpu.dimension_semantics<parallel>], iteration_bounds = array<i64: 2>, scalar_prefetch = 0 : i64, scratch_operands = 0 : i64, tpu.core_type = #tpu.core_type<tc>, window_params = [{transform_indices = @transform_0, window_bounds = array<i64: 1, 256, 4>}, {transform_indices = @transform_1, window_bounds = array<i64: 1, 4, 256>}]} {
    %c0 = arith.constant 0 : index
    %c0_0 = arith.constant 0 : index
    %c0_1 = arith.constant 0 : index
    %0 = vector.load %arg1[%c0, %c0_0, %c0_1] : memref<1x256x4xf32, #tpu.memory_space<vmem>>, vector<1x256x4xf32>
    %1 = tpu.transpose %0, [0, 2, 1] : vector<1x256x4xf32> -> vector<1x4x256xf32>
    %c0_2 = arith.constant 0 : index
    %c0_3 = arith.constant 0 : index
    %c0_4 = arith.constant 0 : index
    %2 = vector.load %arg2[%c0_2, %c0_3, %c0_4] : memref<1x4x256xf32, #tpu.memory_space<vmem>>, vector<1x4x256xf32>
    tpu.vector_store %arg2[%c0_2, %c0_3, %c0_4], %1 {strides = array<i32>} : memref<1x4x256xf32, #tpu.memory_space<vmem>>, vector<1x4x256xf32>,
    return
  }
  func.func @transform_0(%arg0: i32) -> (i32, i32, i32) {
    %c0_i32 = arith.constant 0 : i32
    %c0_i32_0 = arith.constant 0 : i32
    %c0_i32_1 = arith.constant 0 : i32
    return %arg0, %c0_i32, %c0_i32_0 : i32, i32, i32
  }
  func.func @transform_1(%arg0: i32) -> (i32, i32, i32) {
    %c0_i32 = arith.constant 0 : i32
    %c0_i32_0 = arith.constant 0 : i32
    %c0_i32_1 = arith.constant 0 : i32
    return %arg0, %c0_i32, %c0_i32_0 : i32, i32, i32
  }
}

</mosaic_0001>

<bundles_post_ra>
// kernel: tpu_custom_call.1
= control target key start
LH: loop header
LB: loop body
LE: loop exit
PB: predicated region body
PF: predicated region fallthrough
CT: control target
= control target key end

     0   :  { %6 = vsyncpa [#allocation3], 0  ;;  %s540_s0 = inlined_call_operand.vmem [shape: f32[2,256,4], index: 0, kind: input, shape index: {}]   ;;  %s541_s1 = inlined_call_operand.hbm [shape: f32[2,4,256], index: 1, kind: output, shape index: {}]  }
   0x1   :  { %8 = vsyncpa [#allocation3 + $0x1], 0  ;;  %s421_s6 = smov 0   ;;  %s423_s7 = smov 0  }
   0x2   :  { %s425_s8 = smov 0   ;;  %s427_s9 = smov 0  }
   0x3 LB: > { %s442_s10 = sadd.s32 4294967295, %s409_s9   ;;  %s294_s11 = sadd.s32 4294967294, %s409_s9   ;;  %s409_s9 = sphi %s427_s9, %s547_s9   ;;  %s405_s8 = sphi %s425_s8, %s546_s8   ;;  %s401_s7 = sphi %s423_s7, %s545_s7   ;;  %s397_s6 = sphi %s421_s6, %s544_s6  }
   0x4   : > { %s446_s12 = sadd.s32 1, %s409_s9   ;;  %s47_s13 = sadd.s32 1, %s405_s8 }
   0x5   : > { %s44_s14 = ssub.s32 %s409_s9, %s446_s12  ;;  %p57_p0 = scmp.ne.s32.totalorder %s405_s8, %s401_s7 }
   0x6   : > { %p45_p1 = scmp.eq.s32.totalorder %s44_s14, 0  ;;  %p58_p2 = scmp.eq.s32.totalorder %s442_s10, 1 }
   0x7   : > { %p63_p3 = scmp.ne.s32.totalorder %s401_s7, %s397_s6  ;;  %p64_p4 = scmp.eq.s32.totalorder %s294_s11, 1 }
   0x8   : > { %s457_s15 = scalar_select %p45_p1, %s405_s8, %s47_s13  }
   0x9   : > { %p459_p5 = por %p58_p2, %p57_p0  ;;  %p463_p6 = por %p64_p4, %p63_p3 }
   0xa   : > { %p297_p7 = scmp.ge.s32.totalorder %s409_s9, 1  ;;  %p90_p8 = scmp.lt.s32.totalorder %s409_s9, 3 }
   0xc   : > { %p91_p9 = pnand %p297_p7, %p90_p8 }
   0xd   : > { %p110_p10 = scmp.lt.s32.totalorder (!%p91_p9), %s442_s10, 1  ;;  %s107_s23 = sand.u32 (!%p91_p9), 1, %s401_s7  }
   0xe   : > { %94 = sbr.rel (%p91_p9) target bundleno = 195 (0xc3), region = 24  ;;  %s298_s24 = sshll.u32 (!%p91_p9), %s107_s23, 3 }
   0xf   : > { %s307_s25 = sshll.u32 (!%p91_p9), %s442_s10, 3  ;;  %s109_s29 = scalar_lea.vmem (!%p91_p9), [#allocation2], %s298_s24 }
  0x10   : > { %s230_s28 = scalar_lea.hbm (!%p91_p9), %s541_s1, %s307_s25  ;;  %s232_s30 = sshll.u32 (!%p91_p9), %s109_s29, 4  ;;  %s233_s30 = int_to_ptr.vmem [resolvable:$true] %s232_s30 }
  0x11   : > { %s234_s2 = sshll.u32 (!%p91_p9), %s230_s28, 4  ;;  %s219_s3 = scalar_lea.sflag (!%p91_p9), [#allocation3], %s107_s23  ;;  %s235_s2 = int_to_ptr.hbm [resolvable:$true] %s234_s2 }
  0x12   : > { %s361_s4 = sshra.s32 (!%p91_p9), %s235_s2, 4  ;;  %s367_s13 = scalar_lea.hbm (!%p91_p9), %s541_s1, 16  ;;  %s362_s4 = int_to_ptr.hbm [resolvable:$true] %s361_s4 }
  0x13   : > { %s111_s18 = scalar_select %p110_p10, %s442_s10, 1  ;;  %vm214_vm0 = vcmask 1043456  }
  0x14   : > { %s363_s5 = scalar_lea.hbm %s362_s4, 8  ;;  %p368_p0 = scmp.lt.s32.totalorder %s362_s4, %s541_s1 }
  0x15   : > { %s306_s19 = sshll.u32 %s111_s18, 8  ;;  %p364_p11 = scmp.ne.s32.totalorder %s362_s4, %s363_s5 }
  0x16   : > { %s474_s22 = scalar_lea.vmem %s540_s0, %s306_s19  ;;  %p369_p1 = scmp.lt.s32.totalorder %s367_s13, %s363_s5 }
  0x17   : > { %v131_v0 = vld [vmem:[%s474_s22 + $0x80] sm:$0xff]  ;;  %v132_v2 = vld [vmem:[%s474_s22 + $0x88] sm:$0xff]  ;;  %v133_v4 = vld [vmem:[%s474_s22 + $0x90] sm:$0xff]  ;;  %p365_p12 = pnand %p364_p11, %p459_p5 }
  0x18   : > { %v115_v1 = vld [vmem:[%s474_s22] sm:$0xff]  ;;  %179 = vxpose.xlu1.b32.start [1/16] (narrow) %v131_v0, 8  ;;  %v116_v3 = vld [vmem:[%s474_s22 + $0x8] sm:$0xff]  ;;  %v117_v5 = vld [vmem:[%s474_s22 + $0x10] sm:$0xff]  ;;  %p370_p2 = por %p369_p1, %p368_p0 }
  0x19   : > { %147 = vxpose.xlu0.b32.start [1/16] (narrow) %v115_v1, 8  ;;  %v134_v6 = vld [vmem:[%s474_s22 + $0x98] sm:$0xff]  ;;  %v135_v8 = vld [vmem:[%s474_s22 + $0xa0] sm:$0xff]  ;;  %v136_v10 = vld [vmem:[%s474_s22 + $0xa8] sm:$0xff]  ;;  %p366_p13 = pneg %p365_p12 }
  0x1a   : > { %v118_v7 = vld [vmem:[%s474_s22 + $0x18] sm:$0xff]  ;;  %v119_v9 = vld [vmem:[%s474_s22 + $0x20] sm:$0xff]  ;;  %v120_v11 = vld [vmem:[%s474_s22 + $0x28] sm:$0xff] }
  0x1b   : > { %v137_v12 = vld [vmem:[%s474_s22 + $0xb0] sm:$0xff]  ;;  %v138_v14 = vld [vmem:[%s474_s22 + $0xb8] sm:$0xff]  ;;  %v139_v16 = vld [vmem:[%s474_s22 + $0xc0] sm:$0xff]  ;;  %p371_p3 = pnand %p370_p2, %p366_p13 }
  0x1c   : > { %v121_v13 = vld [vmem:[%s474_s22 + $0x30] sm:$0xff]  ;;  %v122_v15 = vld [vmem:[%s474_s22 + $0x38] sm:$0xff]  ;;  %v123_v17 = vld [vmem:[%s474_s22 + $0x40] sm:$0xff] }
  0x1d   : > { %v140_v18 = vld [vmem:[%s474_s22 + $0xc8] sm:$0xff]  ;;  %v141_v20 = vld [vmem:[%s474_s22 + $0xd0] sm:$0xff]  ;;  %v142_v22 = vld [vmem:[%s474_s22 + $0xd8] sm:$0xff] }
  0x1e   : > { %v124_v19 = vld [vmem:[%s474_s22 + $0x48] sm:$0xff]  ;;  %v125_v21 = vld [vmem:[%s474_s22 + $0x50] sm:$0xff]  ;;  %v126_v23 = vld [vmem:[%s474_s22 + $0x58] sm:$0xff] }
  0x1f   : > { %v143_v24 = vld [vmem:[%s474_s22 + $0xe0] sm:$0xff]  ;;  %v144_v26 = vld [vmem:[%s474_s22 + $0xe8] sm:$0xff]  ;;  %v145_v28 = vld [vmem:[%s474_s22 + $0xf0] sm:$0xff] }
  0x20   : > { %180 = vxpose.xlu1.b32.cont [2/16] (narrow) %v132_v2, 8  ;;  %v127_v25 = vld [vmem:[%s474_s22 + $0x60] sm:$0xff]  ;;  %v128_v27 = vld [vmem:[%s474_s22 + $0x68] sm:$0xff]  ;;  %v129_v29 = vld [vmem:[%s474_s22 + $0x70] sm:$0xff] }
  0x21   : > { %148 = vxpose.xlu0.b32.cont [2/16] (narrow) %v116_v3, 8  ;;  %v146_v30 = vld [vmem:[%s474_s22 + $0xf8] sm:$0xff] }
  0x22   : > { %v130_v31 = vld [vmem:[%s474_s22 + $0x78] sm:$0xff] }
  0x28   : > { %181 = vxpose.xlu1.b32.cont [3/16] (narrow) %v133_v4, 8 }
  0x29   : > { %149 = vxpose.xlu0.b32.cont [3/16] (narrow) %v117_v5, 8 }
  0x30   : > { %182 = vxpose.xlu1.b32.cont [4/16] (narrow) %v134_v6, 8 }
  0x31   : > { %150 = vxpose.xlu0.b32.cont [4/16] (narrow) %v118_v7, 8 }
  0x38   : > { %183 = vxpose.xlu1.b32.cont [5/16] (narrow) %v135_v8, 8 }
  0x39   : > { %151 = vxpose.xlu0.b32.cont [5/16] (narrow) %v119_v9, 8 }
  0x40   : > { %184 = vxpose.xlu1.b32.cont [6/16] (narrow) %v136_v10, 8 }
  0x41   : > { %152 = vxpose.xlu0.b32.cont [6/16] (narrow) %v120_v11, 8 }
  0x48   : > { %185 = vxpose.xlu1.b32.cont [7/16] (narrow) %v137_v12, 8 }
  0x49   : > { %153 = vxpose.xlu0.b32.cont [7/16] (narrow) %v121_v13, 8 }
  0x50   : > { %186 = vxpose.xlu1.b32.cont [8/16] (narrow) %v138_v14, 8 }
  0x51   : > { %154 = vxpose.xlu0.b32.cont [8/16] (narrow) %v122_v15, 8 }
  0x58   : > { %187 = vxpose.xlu1.b32.cont [9/16] (narrow) %v139_v16, 8 }
  0x59   : > { %155 = vxpose.xlu0.b32.cont [9/16] (narrow) %v123_v17, 8 }
  0x60   : > { %188 = vxpose.xlu1.b32.cont [10/16] (narrow) %v140_v18, 8 }
  0x61   : > { %156 = vxpose.xlu0.b32.cont [10/16] (narrow) %v124_v19, 8 }
  0x68   : > { %189 = vxpose.xlu1.b32.cont [11/16] (narrow) %v141_v20, 8 }
  0x69   : > { %157 = vxpose.xlu0.b32.cont [11/16] (narrow) %v125_v21, 8 }
  0x70   : > { %190 = vxpose.xlu1.b32.cont [12/16] (narrow) %v142_v22, 8 }
  0x71   : > { %158 = vxpose.xlu0.b32.cont [12/16] (narrow) %v126_v23, 8 }
  0x78   : > { %191 = vxpose.xlu1.b32.cont [13/16] (narrow) %v143_v24, 8 }
  0x79   : > { %159 = vxpose.xlu0.b32.cont [13/16] (narrow) %v127_v25, 8 }
  0x80   : > { %192 = vxpose.xlu1.b32.cont [14/16] (narrow) %v144_v26, 8 }
  0x81   : > { %160 = vxpose.xlu0.b32.cont [14/16] (narrow) %v128_v27, 8 }
  0x88   : > { %193 = vxpose.xlu1.b32.cont [15/16] (narrow) %v145_v28, 8 }
  0x89   : > { %161 = vxpose.xlu0.b32.cont [15/16] (narrow) %v129_v29, 8 }
  0x90   : > { %194 = vxpose.xlu1.b32.end [16/16] (narrow) %v146_v30, 8 }
  0x91   : > { %162 = vxpose.xlu0.b32.end [16/16] (narrow) %v130_v31, 8 }
  0xbc   : > { %v195_v32 = vpop.trf.xlu1 }
  0xbd   : > { %v163_v33 = vpop.trf.xlu0  ;;  %v213_v34 = vrot.slane %v195_v32, 4 }
  0xbf   : > { %v215_v35 = vsel %vm214_vm0, %v163_v33, %v213_v34 }
  0xc0   : > { %217 = vst [vmem:[%s109_s29] sm:$0xff] %v215_v35 }
  0xc1   : > { %374 = shalt.err (!%p371_p3)
}
  0xc2   : > { %308 = dma.vmem_to_hbm [thread:$0]  (%p459_p5), %s233_s30, 128, %s235_s2, %s219_s3  }
  0xc3 PF: > { %p314_p4 = scmp.ge.s32.totalorder %s409_s9, 2  ;;  %s246_s19 = sand.u32 1, %s397_s6  }
  0xc4   : > { %s247_s20 = scalar_lea.sflag [#allocation3], %s246_s19 }
  0xc5   : > { %p311_p7 = pnand %p314_p4, %p463_p6 }
  0xc7   : > { %p312_p8 = pneg %p311_p7 }
  0xc9   : > { %392 = dma.done.wait (%p312_p8), %s247_s20, 128  }
  0xca   : > { %394 = vsyncadd (%p312_p8), %s247_s20, 4294967168  ;;  %p11_p9 = scmp.ge.s32.totalorder %s446_s12, 4   ;;  %s544_s6 = smov %s401_s7 }
  0xcb   : > { %s545_s7 = smov %s405_s8  ;;  %s546_s8 = smov %s457_s15 }
  0xcc   : > { %s547_s9 = smov %s446_s12  ;;  %13 = sbr.rel (!%p11_p9) target bundleno = 3 (0x3), region = 59 }
  0xd1   :  { %253 = vsyncpa [#allocation3], 1 }
  0xd2   :  { %255 = vsyncpa [#allocation3 + $0x1], 1 }

</bundles_post_ra>
